<compile_context>
chip_gen: v7x
topology: tpu7x:2x2x1
jax: 0.10.0
libtpu: 0.0.40
codegen_flags: <defaults>
</compile_context>

<pallas_src>
import functools

import jax
import jax.numpy as jnp
from jax import lax
from jax.experimental import pallas as pl
from jax.experimental.pallas import tpu as pltpu


_VMEM_LIMIT_BYTES = 48 * 1024 * 1024   # < 64 MiB (v7x physical), > scoped default
_NEG_BIG = -1e9                         # mask for padded key columns (exp -> 0)


def _round_up(x, m):
    return ((x + m - 1) // m) * m


def _device_kind():
    try:
        return jax.devices()[0].device_kind.lower()
    except Exception:
        return ""


def _use_bf16_exp():
    # bf16 EUP/VPU exists on v6e and later; v5e/v4/... must keep f32 elementwise.
    kind = _device_kind()
    return not any(t in kind for t in ("v2", "v3", "v4", "v5"))


def _default_tq_target():
    # 128-MiB-VMEM parts (v5e/v6e) can afford bigger score slabs; v7x (64 MiB)
    # and unknown chips stay at 256.
    kind = _device_kind()
    if "v5" in kind or "v6" in kind:
        return 512
    return 256


def _pick_tile(dim, target, align):
    """Largest tile <= target that is a multiple of `align` and divides `dim`;
    falls back to the full dim (always legal for BlockSpec)."""
    if dim <= target:
        return dim
    t = (min(target, dim) // align) * align
    while t >= align:
        if dim % t == 0:
            return t
        t -= align
    return dim


def _attn_tiles(n, tq_target):
    """Pick (tq, padded_N): tq a multiple of 8, padded_N a multiple of tq.

    Instead of collapsing to one full-N tile for odd NACLIP token counts we
    pad the token axis (least padding wins, larger tile breaks ties) and mask
    the padded keys in omega."""
    tq_target = max(8, (tq_target // 8) * 8)
    if n <= tq_target:
        tq = _round_up(n, 8)
        return tq, tq
    best = None
    t = tq_target
    t_min = max(8, (tq_target // 4) // 8 * 8)
    while t >= t_min:
        n_pad = _round_up(n, t)
        key = (n_pad, -t)              # least padding, then largest tile
        if best is None or key < best[0]:
            best = (key, t, n_pad)
        t -= 8
    return best[1], best[2]


# --------------------------------------------------------------------------
# Tiled linear:  y = x @ w.T + b   (PyTorch nn.Linear semantics)
# --------------------------------------------------------------------------
def _linear_kernel(x_ref, w_ref, b_ref, o_ref, acc_ref):
    @pl.when(pl.program_id(2) == 0)
    def _():
        acc_ref[...] = jnp.zeros_like(acc_ref)

    # bf16 MXU operands (native on v5e/v6e/v7x), f32 accumulation.  The
    # weight's last dim is contracted directly, so (Kout, K) is consumed as
    # stored — no transpose is ever materialized.
    acc_ref[...] += lax.dot_general(
        x_ref[...].astype(jnp.bfloat16), w_ref[...].astype(jnp.bfloat16),
        dimension_numbers=(((1,), (1,)), ((), ())),
        preferred_element_type=jnp.float32)

    @pl.when(pl.program_id(2) == pl.num_programs(2) - 1)
    def _():
        o_ref[...] = (acc_ref[...] + b_ref[...].astype(jnp.float32)
                      ).astype(o_ref.dtype)


def pallas_linear(x, w, b, *, tm=512, tn=512, tk=512, out_dtype=None):
    """x: (M, K), w: (Kout, K), b: (Kout,) -> (M, Kout) in out_dtype."""
    M, K = x.shape
    Kout, K2 = w.shape
    assert K == K2
    out_dtype = jnp.dtype(out_dtype or x.dtype)

    tm = _pick_tile(M, tm, 8)
    tn = _pick_tile(Kout, tn, 128)
    tk = _pick_tile(K, tk, 128)
    grid = (M // tm, Kout // tn, K // tk)

    cost = pl.CostEstimate(
        flops=2 * M * Kout * K,
        transcendentals=0,
        bytes_accessed=int(M * K * x.dtype.itemsize
                           + Kout * K * w.dtype.itemsize
                           + Kout * b.dtype.itemsize
                           + M * Kout * out_dtype.itemsize))

    return pl.pallas_call(
        _linear_kernel,
        out_shape=jax.ShapeDtypeStruct((M, Kout), out_dtype),
        grid_spec=pltpu.PrefetchScalarGridSpec(
            num_scalar_prefetch=0,
            grid=grid,
            in_specs=[
                pl.BlockSpec((tm, tk), lambda i, j, k: (i, k)),
                pl.BlockSpec((tn, tk), lambda i, j, k: (j, k)),
                pl.BlockSpec((1, tn), lambda i, j, k: (0, j)),
            ],
            out_specs=pl.BlockSpec((tm, tn), lambda i, j, k: (i, j)),
            scratch_shapes=[pltpu.VMEM((tm, tn), jnp.float32)],
        ),
        compiler_params=pltpu.CompilerParams(
            dimension_semantics=("parallel", "parallel", "arbitrary"),
            vmem_limit_bytes=_VMEM_LIMIT_BYTES,
        ),
        cost_estimate=cost,
    )(x, w, b.reshape(1, Kout))


# --------------------------------------------------------------------------
# Gaussian-bias attention (NACLIP):  softmax(K@K^T * scale + omega) @ V
# Output block is lane-dense (tq, C); heads are a static in-kernel loop.
# --------------------------------------------------------------------------
def _gauss_attn_kernel(kv_ref, omega_ref, o_ref, *,
                       num_heads, head_dim, scale, tq, channels, bf16_exp):
    # kv_ref   : (1, Np, 2C) bf16 — keys in [..., :C], values in [..., C:]
    # omega_ref: (tq, Np)  f32    — gaussian positional bias rows for this tile
    #                               (padded key columns carry a -1e9 mask)
    # o_ref    : (1, tq, C)
    q0 = pl.multiple_of(pl.program_id(1) * tq, 8)
    omega = omega_ref[...]                                       # (tq, Np) f32

    for h in range(num_heads):     # static, unrolled; per-head work is stored
        c0 = h * head_dim          # immediately so live ranges stay bounded.
        # only the K half of the query rows is loaded (V columns unused);
        # softmax scale folded into the query-side K (tq*Dh mults, not tq*Np).
        kq = (kv_ref[0, pl.ds(q0, tq), c0:c0 + head_dim]
              .astype(jnp.bfloat16) * scale)                        # (tq, Dh)
        kf = kv_ref[0, :, c0:c0 + head_dim].astype(jnp.bfloat16)    # (Np, Dh)
        vf = kv_ref[0, :, channels + c0:channels + c0 + head_dim
                    ].astype(jnp.bfloat16)                          # (Np, Dh)

        # NACLIP logits: K_q @ K^T — bf16 MXU operands, f32 accumulation,
        # head_dim contracted directly (no transpose).
        s = lax.dot_general(kq, kf, (((1,), (1,)), ((), ())),
                            preferred_element_type=jnp.float32)     # (tq, Np)
        s = s + omega
        m = jnp.max(s, axis=-1, keepdims=True)
        if bf16_exp:
            # v6e/v7x: bf16 EUP doubles exp throughput; denom accumulated f32.
            p = jnp.exp((s - m).astype(jnp.bfloat16))
            denom = jnp.sum(p, axis=-1, keepdims=True, dtype=jnp.float32)
        else:
            # v5e has no bf16 VPU/EUP — keep elementwise softmax math in f32.
            p32 = jnp.exp(s - m)
            denom = jnp.sum(p32, axis=-1, keepdims=True)
            p = p32.astype(jnp.bfloat16)

        # bf16 MXU P@V, f32 accumulation; deferred normalization with a
        # (nearly free) EUP approximate reciprocal; direct per-head store.
        pv = lax.dot_general(p, vf, (((1,), (0,)), ((), ())),
                             preferred_element_type=jnp.float32)    # (tq, Dh)
        o_ref[0, :, c0:c0 + head_dim] = (
            pv * pl.reciprocal(denom, approx=True)).astype(o_ref.dtype)


def pallas_gauss_attention(kv, omega, scale, num_heads, *, tq, bf16_exp):
    """kv: (B, Np, 2C) packed [K | V] (bf16); omega: (Np, Np) f32 -> (B, Np, C)."""
    B, Np, C2 = kv.shape
    C = C2 // 2
    head_dim = C // num_heads
    assert Np % tq == 0
    grid = (B, Np // tq)

    cost = pl.CostEstimate(
        flops=2 * 2 * B * num_heads * Np * Np * head_dim,        # scores + P@V
        transcendentals=B * num_heads * Np * Np,                 # exp
        bytes_accessed=int(kv.size * kv.dtype.itemsize
                           + B * Np * Np * omega.dtype.itemsize
                           + B * Np * C * kv.dtype.itemsize))

    kernel = functools.partial(
        _gauss_attn_kernel, num_heads=num_heads, head_dim=head_dim,
        scale=scale, tq=tq, channels=C, bf16_exp=bf16_exp)

    return pl.pallas_call(
        kernel,
        out_shape=jax.ShapeDtypeStruct((B, Np, C), kv.dtype),
        grid_spec=pltpu.PrefetchScalarGridSpec(
            num_scalar_prefetch=0,
            grid=grid,
            in_specs=[
                # K/V block index is constant across the q axis -> no re-DMA
                # between q steps; bf16 halves its VMEM residency (v7x: 64 MiB).
                pl.BlockSpec((1, Np, C2), lambda b, q: (b, 0, 0)),
                pl.BlockSpec((tq, Np), lambda b, q: (q, 0)),
            ],
            out_specs=pl.BlockSpec((1, tq, C), lambda b, q: (b, q, 0)),
        ),
        compiler_params=pltpu.CompilerParams(
            # No cross-iteration accumulation on either axis -> both parallel
            # (lets the q axis use the second TensorCore on v7x at B=1).
            dimension_semantics=("parallel", "parallel"),
            vmem_limit_bytes=_VMEM_LIMIT_BYTES,
        ),
        cost_estimate=cost,
    )(kv, omega)


# --------------------------------------------------------------------------
# Gaussian positional addition (constant; cached in the PyTorch module)
# --------------------------------------------------------------------------
def attention_addition(dim1, dim2, gauss_std, num_prefix_tokens):
    """Closed-form equivalent of gaussian_window + get_attention_addition:
    addition[(i,j),(k,l)] = exp(-((i-k)^2+(j-l)^2) / (2*std^2)), with the
    first `num_prefix_tokens` rows/cols zero."""
    ii, jj = jnp.meshgrid(jnp.arange(dim1, dtype=jnp.float32),
                          jnp.arange(dim2, dtype=jnp.float32), indexing="ij")
    pos = jnp.stack([ii.ravel(), jj.ravel()], axis=-1)          # (P, 2)
    d2 = jnp.sum((pos[:, None, :] - pos[None, :, :]) ** 2, axis=-1)
    core = jnp.exp(-d2 / (2.0 * gauss_std ** 2))                # (P, P)
    P = dim1 * dim2
    out = jnp.zeros((P + num_prefix_tokens, P + num_prefix_tokens), jnp.float32)
    out = out.at[num_prefix_tokens:, num_prefix_tokens:].set(core)
    return out


# --------------------------------------------------------------------------
# Forward pass
# --------------------------------------------------------------------------
def gauss_kernel_attn_forward(x, params, n_patches, gauss_std, num_heads,
                              num_prefix_tokens, *, tq_target=None):
    B, N, C = x.shape
    head_dim = C // num_heads
    scale = head_dim ** (-0.5)

    if tq_target is None:
        tq_target = _default_tq_target()
    tq, Np = _attn_tiles(N, tq_target)
    pad = Np - N
    bf16_exp = _use_bf16_exp()

    omega = attention_addition(n_patches[0], n_patches[1], gauss_std,
                               num_prefix_tokens)                # (N, N) f32
    assert omega.shape[0] == N, "token count must be prefix + n_patches product"

    if pad:
        # Pad the token axis so odd NACLIP token counts (197/577/1025...) keep
        # real q-tiles.  Padded key columns get a large negative bias (exp->0);
        # padded query rows produce garbage and are sliced off at the end.
        omega = jnp.pad(omega, ((0, pad), (0, pad)))
        omega = omega.at[:, N:].set(_NEG_BIG)
        x = jnp.pad(x, ((0, 0), (0, pad), (0, 0)))

    # qkv projection restricted to the K/V rows (indices C:3C): NACLIP never
    # uses Q, so we skip 1/3 of the FLOPs and writeback.  Emitted in bf16 so
    # the attention kernel's resident KV block and its HBM traffic halve.
    kv_w = params["qkv_w"][C:, :]        # (2C, C)
    kv_b = params["qkv_b"][C:]           # (2C,)
    kv = pallas_linear(x.reshape(B * Np, C), kv_w, kv_b,
                       out_dtype=jnp.bfloat16).reshape(B, Np, 2 * C)

    attn_out = pallas_gauss_attention(kv, omega, scale, num_heads,
                                      tq=tq, bf16_exp=bf16_exp)  # (B, Np, C) bf16

    out = pallas_linear(attn_out.reshape(B * Np, C),
                        params["proj_w"], params["proj_b"],
                        out_dtype=x.dtype).reshape(B, Np, C)
    if pad:
        out = out[:, :N, :]
    # attn_drop / proj_drop are identity in eval mode (no-op here).
    return out


# --------------------------------------------------------------------------
# Pure-JAX reference for verification
# --------------------------------------------------------------------------
def reference_forward(x, params, omega, num_heads):
    B, N, C = x.shape
    Dh = C // num_heads
    scale = Dh ** (-0.5)
    qkv = x @ params["qkv_w"].T + params["qkv_b"]
    q, k, v = jnp.split(qkv, 3, axis=-1)

    def to_heads(t):
        return t.reshape(B, N, num_heads, Dh).transpose(0, 2, 1, 3).reshape(
            B * num_heads, N, Dh)

    k, v = to_heads(k), to_heads(v)
    s = jnp.einsum("bnd,bmd->bnm", k, k) * scale + omega[None]
    p = jax.nn.softmax(s, axis=-1)
    o = jnp.einsum("bnm,bmd->bnd", p, v)
    o = o.reshape(B, num_heads, N, Dh).transpose(0, 2, 1, 3).reshape(B, N, C)
    return o @ params["proj_w"].T + params["proj_b"]


# --------------------------------------------------------------------------
if __name__ == "__main__":
    key = jax.random.PRNGKey(0)

    # Small configuration consistent with the module's forward semantics.
    # num_prefix_tokens=1 + 5x5 patches gives N=26 (odd-ish) to exercise the
    # token padding / key-masking path.
    B = 2
    num_heads = 2
    head_dim = 32
    C = num_heads * head_dim          # dim = 64
    num_prefix_tokens = 1
    h = w = 80                        # input_resolution
    n_patches = (w // 16, h // 16)    # (5, 5)
    N = num_prefix_tokens + n_patches[0] * n_patches[1]   # 26 tokens
    gauss_std = 5.0

    k1, k2, k3, k4, k5 = jax.random.split(key, 5)
    params = {
        "qkv_w": jax.random.normal(k1, (3 * C, C), jnp.float32) * 0.05,
        "qkv_b": jax.random.normal(k2, (3 * C,), jnp.float32) * 0.02,
        "proj_w": jax.random.normal(k3, (C, C), jnp.float32) * 0.05,
        "proj_b": jax.random.normal(k4, (C,), jnp.float32) * 0.02,
    }
    x = jax.random.normal(k5, (B, N, C), jnp.float32)

    out = gauss_kernel_attn_forward(x, params, n_patches, gauss_std,
                                    num_heads, num_prefix_tokens)
    out = jax.block_until_ready(out)

    omega32 = attention_addition(n_patches[0], n_patches[1], gauss_std,
                                 num_prefix_tokens)
    ref = jax.block_until_ready(reference_forward(x, params, omega32, num_heads))

    assert out.shape == (B, N, C)
    # bf16 MXU operands + approx reciprocal => not bit-exact vs the f32 reference.
    assert jnp.allclose(out, ref, atol=2e-2, rtol=2e-2), (
        f"max abs err {jnp.max(jnp.abs(out - ref))}")
    print("KERNEL_OK")
</pallas_src>

<mosaic_0001>
module attributes {stable_mosaic.version = 11 : i64} {
  func.func @_linear_kernel(%arg0: i32, %arg1: i32, %arg2: i32, %arg3: memref<64x64xf32, #tpu.memory_space<vmem>>, %arg4: memref<128x64xf32, #tpu.memory_space<vmem>>, %arg5: memref<1x128xf32, #tpu.memory_space<vmem>>, %arg6: memref<64x128xbf16, #tpu.memory_space<vmem>>, %arg7: memref<64x128xf32, #tpu.memory_space<vmem>>) attributes {dimension_semantics = [#tpu.dimension_semantics<parallel>, #tpu.dimension_semantics<parallel>, #tpu.dimension_semantics<arbitrary>], iteration_bounds = array<i64: 1, 1, 1>, scalar_prefetch = 0 : i64, scratch_operands = 1 : i64, tpu.core_type = #tpu.core_type<tc>, window_params = [{transform_indices = @transform_0, window_bounds = array<i64: 64, 64>}, {transform_indices = @transform_1, window_bounds = array<i64: 128, 64>}, {transform_indices = @transform_2, window_bounds = array<i64: 1, 128>}, {transform_indices = @transform_3, window_bounds = array<i64: 64, 128>}]} {
    %c0_i32 = arith.constant 0 : i32
    %0 = arith.cmpi eq, %arg2, %c0_i32 : i32
    %1 = arith.extui %0 : i1 to i32
    %c0_i32_0 = arith.constant 0 : i32
    %2 = arith.cmpi ne, %1, %c0_i32_0 : i32
    scf.if %2 {
      %cst_10 = arith.constant 0.000000e+00 : f32
      %14 = vector.broadcast %cst_10 : f32 to vector<64x128xf32>
      %c0_11 = arith.constant 0 : index
      %c0_12 = arith.constant 0 : index
      %15 = vector.load %arg7[%c0_11, %c0_12] : memref<64x128xf32, #tpu.memory_space<vmem>>, vector<64x128xf32>
      tpu.vector_store %arg7[%c0_11, %c0_12], %14 {strides = array<i32>} : memref<64x128xf32, #tpu.memory_space<vmem>>, vector<64x128xf32>,
    } else {
    }
    %c0 = arith.constant 0 : index
    %c0_1 = arith.constant 0 : index
    %3 = vector.load %arg7[%c0, %c0_1] : memref<64x128xf32, #tpu.memory_space<vmem>>, vector<64x128xf32>
    %c0_2 = arith.constant 0 : index
    %c0_3 = arith.constant 0 : index
    %4 = vector.load %arg3[%c0_2, %c0_3] : memref<64x64xf32, #tpu.memory_space<vmem>>, vector<64x64xf32>
    %5 = arith.truncf %4 : vector<64x64xf32> to vector<64x64xbf16>
    %c0_4 = arith.constant 0 : index
    %c0_5 = arith.constant 0 : index
    %6 = vector.load %arg4[%c0_4, %c0_5] : memref<128x64xf32, #tpu.memory_space<vmem>>, vector<128x64xf32>
    %7 = arith.truncf %6 : vector<128x64xf32> to vector<128x64xbf16>
    %cst = arith.constant dense<0.000000e+00> : vector<64x128xf32>
    %8 = tpu.matmul %5, %7, %cst {dimension_numbers = #tpu.dot_dimension_numbers<[1], [1], [0], [0], [0, 0, 1, 0], [], []>} : vector<64x64xbf16>, vector<128x64xbf16>, vector<64x128xf32> -> vector<64x128xf32>
    %9 = arith.addf %3, %8 : vector<64x128xf32>
    %c0_6 = arith.constant 0 : index
    %c0_7 = arith.constant 0 : index
    %10 = vector.load %arg7[%c0_6, %c0_7] : memref<64x128xf32, #tpu.memory_space<vmem>>, vector<64x128xf32>
    tpu.vector_store %arg7[%c0_6, %c0_7], %9 {strides = array<i32>} : memref<64x128xf32, #tpu.memory_space<vmem>>, vector<64x128xf32>,
    %c0_i32_8 = arith.constant 0 : i32
    %11 = arith.cmpi eq, %arg2, %c0_i32_8 : i32
    %12 = arith.extui %11 : i1 to i32
    %c0_i32_9 = arith.constant 0 : i32
    %13 = arith.cmpi ne, %12, %c0_i32_9 : i32
    scf.if %13 {
      %c0_10 = arith.constant 0 : index
      %c0_11 = arith.constant 0 : index
      %14 = vector.load %arg7[%c0_10, %c0_11] : memref<64x128xf32, #tpu.memory_space<vmem>>, vector<64x128xf32>
      %c0_12 = arith.constant 0 : index
      %c0_13 = arith.constant 0 : index
      %15 = vector.load %arg5[%c0_12, %c0_13] : memref<1x128xf32, #tpu.memory_space<vmem>>, vector<1x128xf32>
      %16 = vector.broadcast %15 : vector<1x128xf32> to vector<64x128xf32>
      %17 = arith.addf %14, %16 : vector<64x128xf32>
      %18 = arith.truncf %17 : vector<64x128xf32> to vector<64x128xbf16>
      %c0_14 = arith.constant 0 : index
      %c0_15 = arith.constant 0 : index
      %19 = vector.load %arg6[%c0_14, %c0_15] : memref<64x128xbf16, #tpu.memory_space<vmem>>, vector<64x128xbf16>
      tpu.vector_store %arg6[%c0_14, %c0_15], %18 {strides = array<i32>} : memref<64x128xbf16, #tpu.memory_space<vmem>>, vector<64x128xbf16>,
    } else {
    }
    return
  }
  func.func @transform_0(%arg0: i32, %arg1: i32, %arg2: i32) -> (i32, i32) {
    %c0_i32 = arith.constant 0 : i32
    return %arg0, %arg2 : i32, i32
  }
  func.func @transform_1(%arg0: i32, %arg1: i32, %arg2: i32) -> (i32, i32) {
    %c0_i32 = arith.constant 0 : i32
    return %arg1, %arg2 : i32, i32
  }
  func.func @transform_2(%arg0: i32, %arg1: i32, %arg2: i32) -> (i32, i32) {
    %c0_i32 = arith.constant 0 : i32
    %c0_i32_0 = arith.constant 0 : i32
    return %c0_i32, %arg1 : i32, i32
  }
  func.func @transform_3(%arg0: i32, %arg1: i32, %arg2: i32) -> (i32, i32) {
    %c0_i32 = arith.constant 0 : i32
    return %arg0, %arg1 : i32, i32
  }
}

</mosaic_0001>

<bundles_post_ra>
// kernel: tpu_custom_call.1
= control target key start
LH: loop header
LB: loop body
LE: loop exit
PB: predicated region body
PF: predicated region fallthrough
CT: control target
= control target key end

     0   :  { %vm72_vm0 = vcmask 523264   ;;  %s549_s0 = inlined_call_operand.vmem [shape: f32[64,64], index: 0, kind: input, shape index: {}]   ;;  %s550_s1 = inlined_call_operand.vmem [shape: f32[128,64], index: 1, kind: input, shape index: {}]   ;;  %s551_s2 = inlined_call_operand.vmem [shape: f32[1,128], index: 2, kind: input, shape index: {}]   ;;  %s552_s3 = inlined_call_operand.hbm [shape: bf16[64,128], index: 3, kind: output, shape index: {}]  }
   0x1   :  { %v48_v0 = vld [vmem:[%s550_s1] sm:$0xff]  ;;  %v49_v1 = vld [vmem:[%s550_s1 + $0x8] sm:$0xff]  ;;  %v50_v2 = vld [vmem:[%s550_s1 + $0x10] sm:$0xff] }
   0x2   :  { %v64_v3 = vpack.c.bf16 %v49_v1, %v48_v0  ;;  %v51_v4 = vld [vmem:[%s550_s1 + $0x18] sm:$0xff]  ;;  %v52_v7 = vld [vmem:[%s550_s1 + $0x20] sm:$0xff]  ;;  %v37_v9 = vld [vmem:[%s549_s0 + $0x8] sm:$0xff] }
   0x3   :  { %v65_v5 = vpack.c.bf16 %v51_v4, %v50_v2  ;;  %v36_v8 = vld [vmem:[%s549_s0] sm:$0xff]  ;;  %v53_v10 = vld [vmem:[%s550_s1 + $0x28] sm:$0xff] }
   0x4   :  { %368 = vmatprep.subr.msk.bf16.mxu0 %vm72_vm0, %v64_v3  ;;  %369 = vmatprep.subr.msk.bf16.mxu1 %vm72_vm0, %v64_v3  ;;  %v86_v6 = vsel %vm72_vm0, %v64_v3, 0  ;;  %v44_v11 = vpack.c.bf16 %v37_v9, %v36_v8  ;;  %v40_v12 = vld [vmem:[%s549_s0 + $0x20] sm:$0xff]  ;;  %v41_v13 = vld [vmem:[%s549_s0 + $0x28] sm:$0xff] }
   0x5   :  { %329 = vmatpush3.bf16.xpose.msra.mxu0 %v86_v6  ;;  %360 = vmatpush3.bf16.xpose.msra.mxu1 %v86_v6  ;;  %v46_v14 = vpack.c.bf16 %v41_v13, %v40_v12 }
   0x6   :  { %370 = vmatprep.subr.msk.bf16.mxu0 %vm72_vm0, %v65_v5  ;;  %371 = vmatprep.subr.msk.bf16.mxu1 %vm72_vm0, %v65_v5 }
   0x7   :  { %344 = vmatprep.mubr.msk.bf16.mxu0 %vm72_vm0, %v44_v11 }
   0x8   :  { %8 = vsyncpa [#allocation4], 0  ;;  %v89_v15 = vsel %vm72_vm0, %v65_v5, 0  ;;  %v66_v16 = vpack.c.bf16 %v53_v10, %v52_v7  ;;  %348 = vmatprep.mubr.msk.bf16.mxu1 %vm72_vm0, %v46_v14  ;;  %v54_v17 = vld [vmem:[%s550_s1 + $0x30] sm:$0xff]  ;;  %v55_v18 = vld [vmem:[%s550_s1 + $0x38] sm:$0xff]  ;;  %s411_s7 = smov [#allocation3]  }
   0x9   :  { %v67_v20 = vpack.c.bf16 %v55_v18, %v54_v17  ;;  %v56_v21 = vld [vmem:[%s550_s1 + $0x40] sm:$0xff]  ;;  %v57_v22 = vld [vmem:[%s550_s1 + $0x48] sm:$0xff]  ;;  %v58_v25 = vld [vmem:[%s550_s1 + $0x50] sm:$0xff]  ;;  %s261_s8 = sshll.u32 %s411_s7, 4  ;;  %s262_s8 = int_to_ptr.vmem [resolvable:$true] %s261_s8 }
   0xa   :  { %v92_v19 = vsel %vm72_vm0, %v66_v16, 0  ;;  %v68_v24 = vpack.c.bf16 %v57_v22, %v56_v21  ;;  %v59_v26 = vld [vmem:[%s550_s1 + $0x58] sm:$0xff]  ;;  %v60_v29 = vld [vmem:[%s550_s1 + $0x60] sm:$0xff]  ;;  %v61_v30 = vld [vmem:[%s550_s1 + $0x68] sm:$0xff]  ;;  %p392_p1 = scmp.lt.s32.totalorder %s262_s8, %s262_s8 }
   0xb   :  { %v95_v23 = vsel %vm72_vm0, %v67_v20, 0  ;;  %v69_v28 = vpack.c.bf16 %v59_v26, %v58_v25  ;;  %v70_v32 = vpack.c.bf16 %v61_v30, %v60_v29  ;;  %v62_v33 = vld [vmem:[%s550_s1 + $0x70] sm:$0xff]  ;;  %v63_v34 = vld [vmem:[%s550_s1 + $0x78] sm:$0xff]  ;;  %v276_v45 = vld [vmem:[%s551_s2] ss:$0 sm:$0xff] }
   0xc   :  { %v98_v27 = vsel %vm72_vm0, %v68_v24, 0  ;;  %v71_v36 = vpack.c.bf16 %v63_v34, %v62_v33  ;;  %v38_v38 = vld [vmem:[%s549_s0 + $0x10] sm:$0xff]  ;;  %v39_v39 = vld [vmem:[%s549_s0 + $0x18] sm:$0xff] }
   0xd   :  { %331 = vmatpush3.bf16.xpose.msra.mxu0 %v89_v15  ;;  %361 = vmatpush3.bf16.xpose.msra.mxu1 %v89_v15  ;;  %v101_v31 = vsel %vm72_vm0, %v69_v28, 0  ;;  %v104_v35 = vsel %vm72_vm0, %v70_v32, 0  ;;  %v42_v40 = vld [vmem:[%s549_s0 + $0x30] sm:$0xff]  ;;  %v43_v41 = vld [vmem:[%s549_s0 + $0x38] sm:$0xff]  ;;  %v45_v42 = vpack.c.bf16 %v39_v39, %v38_v38  ;;  %s387_s0 = scalar_lea.vmem %s262_s8, 512 }
   0xe   :  { %372 = vmatprep.subr.msk.bf16.mxu0 %vm72_vm0, %v66_v16  ;;  %373 = vmatprep.subr.msk.bf16.mxu1 %vm72_vm0, %v66_v16  ;;  %v107_v37 = vsel %vm72_vm0, %v71_v36, 0  ;;  %v47_v43 = vpack.c.bf16 %v43_v41, %v42_v40  ;;  %p388_p0 = scmp.ne.s32.totalorder %s262_s8, %s387_s0  ;;  %p393_p2 = scmp.lt.s32.totalorder %s387_s0, %s387_s0 }
  0x10   :  { %p394_p3 = por %p393_p2, %p392_p1 }
  0x12   :  { %p395_p4 = pnand %p394_p3, %p388_p0 }
  0x15   :  { %333 = vmatpush3.bf16.xpose.msra.mxu0 %v92_v19  ;;  %362 = vmatpush3.bf16.xpose.msra.mxu1 %v92_v19 }
  0x16   :  { %374 = vmatprep.subr.msk.bf16.mxu0 %vm72_vm0, %v67_v20  ;;  %375 = vmatprep.subr.msk.bf16.mxu1 %vm72_vm0, %v67_v20 }
  0x1d   :  { %335 = vmatpush3.bf16.xpose.msra.mxu0 %v95_v23  ;;  %363 = vmatpush3.bf16.xpose.msra.mxu1 %v95_v23 }
  0x1e   :  { %376 = vmatprep.subr.msk.bf16.mxu0 %vm72_vm0, %v68_v24  ;;  %377 = vmatprep.subr.msk.bf16.mxu1 %vm72_vm0, %v68_v24 }
  0x25   :  { %337 = vmatpush3.bf16.xpose.msra.mxu0 %v98_v27  ;;  %364 = vmatpush3.bf16.xpose.msra.mxu1 %v98_v27 }
  0x26   :  { %378 = vmatprep.subr.msk.bf16.mxu0 %vm72_vm0, %v69_v28  ;;  %379 = vmatprep.subr.msk.bf16.mxu1 %vm72_vm0, %v69_v28 }
  0x2d   :  { %339 = vmatpush3.bf16.xpose.msra.mxu0 %v101_v31  ;;  %365 = vmatpush3.bf16.xpose.msra.mxu1 %v101_v31 }
  0x2e   :  { %380 = vmatprep.subr.msk.bf16.mxu0 %vm72_vm0, %v70_v32  ;;  %381 = vmatprep.subr.msk.bf16.mxu1 %vm72_vm0, %v70_v32 }
  0x35   :  { %341 = vmatpush3.bf16.xpose.msra.mxu0 %v104_v35  ;;  %366 = vmatpush3.bf16.xpose.msra.mxu1 %v104_v35 }
  0x36   :  { %382 = vmatprep.subr.msk.bf16.mxu0 %vm72_vm0, %v71_v36  ;;  %383 = vmatprep.subr.msk.bf16.mxu1 %vm72_vm0, %v71_v36 }
  0x3d   :  { %343 = vmatpush3.bf16.xpose.msra.mxu0 %v107_v37  ;;  %367 = vmatpush3.bf16.xpose.msra.mxu1 %v107_v37 }
  0x44   :  { %345 = vmatmul.mubr.msk.bf16.vlgmr.msra.gmra.mrb[0].mxu0 %vm72_vm0, %v45_v42  ;;  %349 = vmatmul.mubr.msk.bf16.vlgmr.msra.gmra.mrb[0].mxu1 %vm72_vm0, %v47_v43 }
 0x117   :  { %v346_v44 = vpop.f32.mrb[0].mxu0  ;;  %v350_v46 = vpop.f32.mrb[0].mxu1 }
 0x118   :  { %v143_v47 = vpop.f32.mrb[1].mxu0  ;;  %v159_v48 = vpop.f32.mrb[1].mxu1  ;;  %v210_v51 = vadd.f32 %v346_v44, %v276_v45  ;;  %v214_v52 = vadd.f32 %v350_v46, %v276_v45 }
 0x119   :  { %v347_v49 = vpop.f32.mrb[2].mxu0  ;;  %v351_v50 = vpop.f32.mrb[2].mxu1  ;;  %v208_v57 = vadd.f32 %v276_v45, %v143_v47  ;;  %v212_v58 = vadd.f32 %v276_v45, %v159_v48 }
 0x11a   :  { %v211_v53 = vadd.f32 %v347_v49, %v276_v45  ;;  %v215_v54 = vadd.f32 %v351_v50, %v276_v45  ;;  %v146_v55 = vpop.f32.mrb[3].mxu0  ;;  %v162_v56 = vpop.f32.mrb[3].mxu1 }
 0x11b   :  { %v209_v59 = vadd.f32 %v276_v45, %v146_v55  ;;  %v213_v60 = vadd.f32 %v276_v45, %v162_v56 }
 0x11c   :  { %v301_v61 = vpack.c.bf16 %v211_v53, %v210_v51  ;;  %v311_v62 = vpack.c.bf16 %v215_v54, %v214_v52 }
 0x11d   :  { %v296_v63 = vpack.c.bf16 %v209_v59, %v208_v57  ;;  %v306_v0 = vpack.c.bf16 %v213_v60, %v212_v58 }
 0x11e   :  { %313 = vst [vmem:[#allocation3 + $0x8] sm:$0xff] %v301_v61   ;;  %315 = vst [vmem:[#allocation3 + $0x18] sm:$0xff] %v311_v62  }
 0x11f   :  { %297 = vst [vmem:[#allocation3] sm:$0xff] %v296_v63   ;;  %314 = vst [vmem:[#allocation3 + $0x10] sm:$0xff] %v306_v0  }
 0x120   :  { %398 = shalt.err (!%p395_p4)
}
 0x121   :  { %s399_s10 = scalar_lea.hbm %s552_s3, 512 }
 0x122   :  { %p400_p5 = scmp.ne.s32.totalorder %s552_s3, %s399_s10  ;;  %p403_p6 = scmp.lt.u32.totalorder %s399_s10, %s552_s3 }
 0x124   :  { %p405_p7 = pnand %p403_p6, %p400_p5 }
 0x126   :  { %408 = shalt.err (!%p405_p7)
}
 0x127   :  { %s412_s15 = smov 64   ;;  %s413_s16 = smov 4  }
 0x128   :  { %267 = dma.vmem_to_hbm [thread:$0]  %s262_s8, 512, %s552_s3, [#allocation4], %s412_s15, %s412_s15, %s413_s16  }
 0x129   :  { %409 = dma.done.wait [#allocation4], 512  }
 0x12a   :  { %410 = vsyncadd [#allocation4], 4294966784 }
 0x12b   :  { %271 = vsyncpa [#allocation4], 1 }

</bundles_post_ra>
